<compile_context>
chip_gen: v6e
topology: v6e:2x2x1
jax: 0.10.0
libtpu: 0.0.40
codegen_flags: <defaults>
</compile_context>

<pallas_src>
import functools

import jax
import jax.numpy as jnp
from jax.experimental import pallas as pl
from jax.experimental.pallas import tpu as pltpu


# --------------------------------------------------------------------------
# tiling helpers
# --------------------------------------------------------------------------
def _choose_tile(n, target, quantum):
    """Largest multiple of `quantum` <= target that divides n, else full n."""
    if n <= target:
        return n
    t = (target // quantum) * quantum
    while t >= quantum:
        if n % t == 0:
            return t
        t -= quantum
    return n


# --------------------------------------------------------------------------
# Kernel 1: RMSNorm (F.normalize * sqrt(dim) * gamma) fused with Q/K/V proj
# --------------------------------------------------------------------------
def _rmsnorm_qkv_kernel(x_ref, g_ref, wq_ref, wk_ref, wv_ref,
                        q_ref, k_ref, v_ref, *, scale):
    x = x_ref[...].astype(jnp.float32)                     # (tr, D)
    g = g_ref[...].astype(jnp.float32)                     # (1, D)

    # F.normalize(x, dim=-1): x / max(||x||_2, 1e-12)
    l2 = jnp.sqrt(jnp.sum(x * x, axis=-1, keepdims=True))
    normed = (x / jnp.maximum(l2, 1e-12)) * scale * g

    # feed the MXU operands in the compute dtype, accumulate in fp32
    nx = normed.astype(x_ref.dtype)
    q_ref[...] = jnp.dot(nx, wq_ref[...],
                         preferred_element_type=jnp.float32).astype(q_ref.dtype)
    k_ref[...] = jnp.dot(nx, wk_ref[...],
                         preferred_element_type=jnp.float32).astype(k_ref.dtype)
    v_ref[...] = jnp.dot(nx, wv_ref[...],
                         preferred_element_type=jnp.float32).astype(v_ref.dtype)


def _norm_qkv(x, gamma, wq, wk, wv, *, scale, row_tile=512):
    B, N, D = x.shape
    Di = wq.shape[1]
    R = B * N
    xr = x.reshape(R, D)                                   # free reshape
    tr = _choose_tile(R, row_tile, 8)

    kern = functools.partial(_rmsnorm_qkv_kernel, scale=scale)
    q, k, v = pl.pallas_call(
        kern,
        grid=(R // tr,),
        in_specs=[
            pl.BlockSpec((tr, D), lambda r: (r, 0)),
            pl.BlockSpec((1, D), lambda r: (0, 0)),
            pl.BlockSpec((D, Di), lambda r: (0, 0)),
            pl.BlockSpec((D, Di), lambda r: (0, 0)),
            pl.BlockSpec((D, Di), lambda r: (0, 0)),
        ],
        out_specs=[pl.BlockSpec((tr, Di), lambda r: (r, 0))] * 3,
        out_shape=(
            jax.ShapeDtypeStruct((R, Di), x.dtype),
            jax.ShapeDtypeStruct((R, Di), x.dtype),
            jax.ShapeDtypeStruct((R, Di), x.dtype),
        ),
        compiler_params=pltpu.CompilerParams(dimension_semantics=("parallel",)),
    )(xr, gamma.reshape(1, D), wq, wk, wv)
    return (q.reshape(B, N, Di), k.reshape(B, N, Di), v.reshape(B, N, Di))


# --------------------------------------------------------------------------
# Kernel 2: rotary + flash attention (online softmax) + output projection
# --------------------------------------------------------------------------
def _flash_attn_kernel(*refs, heads, dh, scale, causal, use_rotary, use_mask):
    it = iter(refs)
    q_ref = next(it)                                       # (tq,  H*dh)
    k_ref = next(it)                                       # (tkv, H*dh)
    v_ref = next(it)                                       # (tkv, H*dh)
    wo_ref = next(it)                                      # (H*dh, D)
    if use_rotary:
        cosq_ref = next(it); sinq_ref = next(it)           # (tq,  dh)
        cosk_ref = next(it); sink_ref = next(it)           # (tkv, dh)
    if use_mask:
        mask_ref = next(it)                                # (1, tkv)
    o_ref = next(it)                                       # (tq, D)
    m_scr = next(it)                                       # (H, tq, 1) f32
    l_scr = next(it)                                       # (H, tq, 1) f32
    acc_scr = next(it)                                     # (tq, H*dh) f32

    ki = pl.program_id(2)
    nk = pl.num_programs(2)
    cdtype = q_ref.dtype
    neg = -jnp.finfo(jnp.float32).max
    half = dh // 2

    @pl.when(ki == 0)
    def _():
        m_scr[...] = jnp.full_like(m_scr, -jnp.inf)
        l_scr[...] = jnp.zeros_like(l_scr)
        acc_scr[...] = jnp.zeros_like(acc_scr)

    if use_rotary:
        cos_q = cosq_ref[...]
        sin_q = sinq_ref[...]          # sign already folded into sin
        cos_k = cosk_ref[...]
        sin_k = sink_ref[...]
    if use_mask:
        kmask = mask_ref[...] != 0                          # (1, tkv)
    if causal:
        row0 = pl.program_id(1) * q_ref.shape[0]
        col0 = ki * k_ref.shape[0]

    def swap_halves(t):
        # rotate_half(t) * sin == swap_halves(t) * sign_folded_sin
        return jnp.concatenate((t[:, half:], t[:, :half]), axis=-1)

    for h in range(heads):
        sl = slice(h * dh, (h + 1) * dh)
        qh = q_ref[:, sl].astype(jnp.float32)               # (tq,  dh)
        kh = k_ref[:, sl].astype(jnp.float32)               # (tkv, dh)
        if use_rotary:
            qh = qh * cos_q + swap_halves(qh) * sin_q
            kh = kh * cos_k + swap_halves(kh) * sin_k
        qh = qh * scale

        sim = jnp.dot(qh.astype(cdtype), kh.astype(cdtype).T,
                      preferred_element_type=jnp.float32)   # (tq, tkv)
        if use_mask:
            sim = jnp.where(kmask, sim, neg)
        if causal:
            ri = row0 + jax.lax.broadcasted_iota(jnp.int32, sim.shape, 0)
            ci = col0 + jax.lax.broadcasted_iota(jnp.int32, sim.shape, 1)
            sim = jnp.where(ci <= ri, sim, neg)

        m_prev = m_scr[h]                                   # (tq, 1)
        m_new = jnp.maximum(m_prev, jnp.max(sim, axis=-1, keepdims=True))
        alpha = jnp.exp(m_prev - m_new)
        p = jnp.exp(sim - m_new)                            # (tq, tkv) f32
        l_scr[h] = alpha * l_scr[h] + jnp.sum(p, axis=-1, keepdims=True)
        acc_scr[:, sl] = alpha * acc_scr[:, sl] + jnp.dot(
            p.astype(cdtype), v_ref[:, sl],
            preferred_element_type=jnp.float32)
        m_scr[h] = m_new

    @pl.when(ki == nk - 1)
    def _():
        parts = []
        for h in range(heads):
            sl = slice(h * dh, (h + 1) * dh)
            inv_l = pl.reciprocal(l_scr[h], approx=True)    # (tq, 1)
            parts.append(acc_scr[:, sl] * inv_l)
        attn_out = jnp.concatenate(parts, axis=-1).astype(cdtype)  # (tq, H*dh)
        # fused output projection -> lane-dense (tq, D) store
        o_ref[...] = jnp.dot(attn_out, wo_ref[...],
                             preferred_element_type=jnp.float32).astype(o_ref.dtype)


def _flash_attend(q, k, v, wo, cos, sin_sw, mask_i32, *, heads, dh, causal,
                  q_tile=256, kv_tile=512):
    # Tile budgets chosen conservatively so double-buffered q/k/v tiles +
    # fp32 accumulators fit the default scoped-VMEM on all generations
    # (v7x has only 64 MiB physical VMEM; shrink q_tile/kv_tile there if
    # head count / head_dim grow).
    B, N, Di = q.shape
    D = wo.shape[1]
    use_rotary = cos is not None
    use_mask = mask_i32 is not None

    tq = _choose_tile(N, q_tile, 8)
    tkv = _choose_tile(N, kv_tile, 128)     # 128-quantum keeps mask block legal
    grid = (B, N // tq, N // tkv)

    kern = functools.partial(
        _flash_attn_kernel, heads=heads, dh=dh, scale=dh ** -0.5,
        causal=causal, use_rotary=use_rotary, use_mask=use_mask)

    in_specs = [
        pl.BlockSpec((None, tq, Di), lambda b, qi, ki: (b, qi, 0)),   # q
        pl.BlockSpec((None, tkv, Di), lambda b, qi, ki: (b, ki, 0)),  # k
        pl.BlockSpec((None, tkv, Di), lambda b, qi, ki: (b, ki, 0)),  # v
        pl.BlockSpec((Di, D), lambda b, qi, ki: (0, 0)),              # wo
    ]
    args = [q, k, v, wo]
    if use_rotary:
        in_specs += [
            pl.BlockSpec((tq, dh), lambda b, qi, ki: (qi, 0)),        # cos @ q rows
            pl.BlockSpec((tq, dh), lambda b, qi, ki: (qi, 0)),        # sin @ q rows
            pl.BlockSpec((tkv, dh), lambda b, qi, ki: (ki, 0)),       # cos @ k rows
            pl.BlockSpec((tkv, dh), lambda b, qi, ki: (ki, 0)),       # sin @ k rows
        ]
        args += [cos, sin_sw, cos, sin_sw]
    if use_mask:
        in_specs.append(pl.BlockSpec((None, 1, tkv), lambda b, qi, ki: (b, 0, ki)))
        args.append(mask_i32)

    out = pl.pallas_call(
        kern,
        grid=grid,
        in_specs=in_specs,
        out_specs=pl.BlockSpec((None, tq, D), lambda b, qi, ki: (b, qi, 0)),
        out_shape=jax.ShapeDtypeStruct((B, N, D), q.dtype),
        scratch_shapes=[
            pltpu.VMEM((heads, tq, 1), jnp.float32),     # running max m
            pltpu.VMEM((heads, tq, 1), jnp.float32),     # running denom l
            pltpu.VMEM((tq, heads * dh), jnp.float32),   # un-normalized acc
        ],
        compiler_params=pltpu.CompilerParams(
            dimension_semantics=("parallel", "parallel", "arbitrary")),
    )(*args)
    return out


# --------------------------------------------------------------------------
# Full module forward (thin JAX glue)
# --------------------------------------------------------------------------
def attention_forward(params, x, rotary_emb=None, mask=None, xl_memories=None,
                      *, heads, causal=False):
    # TODO(synk): xl_memories path (k/v concat + mask pad) not implemented.
    assert xl_memories is None, "xl_memories path not implemented"

    B, N, D = x.shape
    Di = params["wq"].shape[1]
    dh = Di // heads

    # split the fused kv weight once in the wrapper (cheap, weights only),
    # avoiding non-128-aligned in-kernel kv slicing.
    wkv = params["wkv"]
    wk, wv = wkv[:, :Di], wkv[:, Di:]

    q, k, v = _norm_qkv(x, params["gamma"], params["wq"], wk, wv,
                        scale=D ** 0.5)                     # (B, N, H*dh)

    # next_xl_memories is the pre-rotary, head-split (k, v) stack.
    def split_heads(t):                                     # (B,N,H*dh)->(B,H,N,dh)
        return t.reshape(B, N, heads, dh).transpose(0, 2, 1, 3)
    next_xl_memories = jnp.stack((split_heads(k), split_heads(v)))

    # hoist rotary transcendentals out of the kernel; fold rotate_half's sign
    # into sin so the kernel only needs a half-swap + 2 FMAs.
    if rotary_emb is not None:
        pos = rotary_emb.astype(jnp.float32)                # (N, dh)
        half = dh // 2
        cos = jnp.cos(pos)
        sin = jnp.sin(pos)
        sin_sw = jnp.concatenate((-sin[:, :half], sin[:, half:]), axis=-1)
    else:
        cos = sin_sw = None

    mask_i32 = None if mask is None else mask.astype(jnp.int32).reshape(B, 1, N)

    out = _flash_attend(q, k, v, params["wo"], cos, sin_sw, mask_i32,
                        heads=heads, dh=dh, causal=causal)
    return out, next_xl_memories


# --------------------------------------------------------------------------
# Pure-JAX reference (for correctness check)
# --------------------------------------------------------------------------
def reference_forward(params, x, rotary_emb=None, mask=None, *, heads,
                      causal=False):
    B, N, D = x.shape
    normed = x / jnp.maximum(jnp.linalg.norm(x, axis=-1, keepdims=True), 1e-12)
    normed = normed * (D ** 0.5) * params["gamma"]
    q = normed @ params["wq"]
    kv = normed @ params["wkv"]
    Di = params["wq"].shape[1]
    dh = Di // heads
    k, v = kv[..., :Di], kv[..., Di:]

    def sh(t):
        return t.reshape(B, N, heads, dh).transpose(0, 2, 1, 3)

    q, k, v = map(sh, (q, k, v))
    nxl = jnp.stack((k, v))

    if rotary_emb is not None:
        def rot_half(t):
            t1, t2 = jnp.split(t, 2, axis=-1)
            return jnp.concatenate((-t2, t1), axis=-1)
        cos, sin = jnp.cos(rotary_emb), jnp.sin(rotary_emb)
        q = q * cos + rot_half(q) * sin
        k = k * cos + rot_half(k) * sin

    sim = jnp.einsum("bhid,bhjd->bhij", q, k) * dh ** -0.5
    neg = -jnp.finfo(jnp.float32).max
    if mask is not None:
        sim = jnp.where(mask[:, None, None, :], sim, neg)
    if causal:
        i = jnp.arange(N)[:, None]
        j = jnp.arange(N)[None, :]
        sim = jnp.where(j <= i, sim, neg)
    attn = jax.nn.softmax(sim, axis=-1)
    o = jnp.einsum("bhij,bhjd->bhid", attn, v)
    o = o.transpose(0, 2, 1, 3).reshape(B, N, Di)
    return o @ params["wo"], nxl


# --------------------------------------------------------------------------
if __name__ == "__main__":
    B, N, D = 2, 8, 32
    heads, dim_head = 2, 16
    Di = heads * dim_head

    key = jax.random.PRNGKey(0)
    kx, kq, kkv, ko = jax.random.split(key, 4)

    x = jax.random.normal(kx, (B, N, D), dtype=jnp.float32)
    params = {
        "gamma": jnp.ones((D,), dtype=jnp.float32),                        # RMSNorm gamma
        "wq": 0.05 * jax.random.normal(kq, (D, Di), dtype=jnp.float32),    # to_q
        "wkv": 0.05 * jax.random.normal(kkv, (D, 2 * Di), dtype=jnp.float32),  # to_kv
        "wo": 0.05 * jax.random.normal(ko, (Di, D), dtype=jnp.float32),    # to_out
    }

    # rotary embedding: (N, dim_head), cat((freqs, freqs), -1) convention
    inv_freq = 1.0 / (10000.0 ** (jnp.arange(0, dim_head, 2, dtype=jnp.float32)
                                  / dim_head))
    freqs = jnp.arange(N, dtype=jnp.float32)[:, None] * inv_freq[None, :]
    rotary_emb = jnp.concatenate((freqs, freqs), axis=-1)                  # (N, dim_head)

    # --- case A: rotary, no mask, non-causal ------------------------------
    out_a, nxl_a = attention_forward(params, x, rotary_emb=rotary_emb,
                                     mask=None, xl_memories=None,
                                     heads=heads, causal=False)
    out_a = jax.block_until_ready(out_a)
    nxl_a = jax.block_until_ready(nxl_a)
    ref_a, refxl_a = reference_forward(params, x, rotary_emb=rotary_emb,
                                       mask=None, heads=heads, causal=False)
    assert out_a.shape == (B, N, D)
    assert nxl_a.shape == (2, B, heads, N, dim_head)
    assert jnp.allclose(out_a, ref_a, atol=2e-3, rtol=2e-3), \
        float(jnp.max(jnp.abs(out_a - ref_a)))
    assert jnp.allclose(nxl_a, refxl_a, atol=1e-3, rtol=1e-3)

    # --- case B: rotary + key-padding mask + causal -----------------------
    mask = jnp.ones((B, N), dtype=bool).at[0, -1].set(False)
    out_b, _ = attention_forward(params, x, rotary_emb=rotary_emb,
                                 mask=mask, xl_memories=None,
                                 heads=heads, causal=True)
    out_b = jax.block_until_ready(out_b)
    ref_b, _ = reference_forward(params, x, rotary_emb=rotary_emb, mask=mask,
                                 heads=heads, causal=True)
    assert jnp.allclose(out_b, ref_b, atol=2e-3, rtol=2e-3), \
        float(jnp.max(jnp.abs(out_b - ref_b)))

    print("KERNEL_OK")
</pallas_src>

<mosaic_0001>
module attributes {stable_mosaic.version = 11 : i64} {
  func.func @_rmsnorm_qkv_kernel(%arg0: i32, %arg1: memref<16x32xf32, #tpu.memory_space<vmem>>, %arg2: memref<1x32xf32, #tpu.memory_space<vmem>>, %arg3: memref<32x32xf32, #tpu.memory_space<vmem>>, %arg4: memref<32x32xf32, #tpu.memory_space<vmem>>, %arg5: memref<32x32xf32, #tpu.memory_space<vmem>>, %arg6: memref<16x32xf32, #tpu.memory_space<vmem>>, %arg7: memref<16x32xf32, #tpu.memory_space<vmem>>, %arg8: memref<16x32xf32, #tpu.memory_space<vmem>>) attributes {dimension_semantics = [#tpu.dimension_semantics<parallel>], iteration_bounds = array<i64: 1>, scalar_prefetch = 0 : i64, scratch_operands = 0 : i64, tpu.core_type = #tpu.core_type<tc>, window_params = [{transform_indices = @transform_0, window_bounds = array<i64: 16, 32>}, {pipeline_mode = #tpu.pipeline_mode<synchronous>, transform_indices = @transform_1, window_bounds = array<i64: 1, 32>}, {pipeline_mode = #tpu.pipeline_mode<synchronous>, transform_indices = @transform_2, window_bounds = array<i64: 32, 32>}, {pipeline_mode = #tpu.pipeline_mode<synchronous>, transform_indices = @transform_3, window_bounds = array<i64: 32, 32>}, {pipeline_mode = #tpu.pipeline_mode<synchronous>, transform_indices = @transform_4, window_bounds = array<i64: 32, 32>}, {transform_indices = @transform_5, window_bounds = array<i64: 16, 32>}, {transform_indices = @transform_6, window_bounds = array<i64: 16, 32>}, {transform_indices = @transform_7, window_bounds = array<i64: 16, 32>}]} {
    %c0 = arith.constant 0 : index
    %c0_0 = arith.constant 0 : index
    %0 = vector.load %arg1[%c0, %c0_0] : memref<16x32xf32, #tpu.memory_space<vmem>>, vector<16x32xf32>
    %c0_1 = arith.constant 0 : index
    %c0_2 = arith.constant 0 : index
    %1 = vector.load %arg2[%c0_1, %c0_2] : memref<1x32xf32, #tpu.memory_space<vmem>>, vector<1x32xf32>
    %2 = arith.mulf %0, %0 : vector<16x32xf32>
    %cst = arith.constant dense<0.000000e+00> : vector<16xf32>
    %3 = vector.multi_reduction <add>, %2, %cst [1] : vector<16x32xf32> to vector<16xf32>
    %4 = vector.shape_cast %3 : vector<16xf32> to vector<16x1xf32>
    %5 = math.sqrt %4 : vector<16x1xf32>
    %cst_3 = arith.constant 9.99999996E-13 : f32
    %6 = vector.broadcast %cst_3 : f32 to vector<16x1xf32>
    %7 = arith.maximumf %5, %6 : vector<16x1xf32>
    %8 = vector.broadcast %7 : vector<16x1xf32> to vector<16x32xf32>
    %9 = arith.divf %0, %8 : vector<16x32xf32>
    %cst_4 = arith.constant 5.65685415 : f32
    %10 = vector.broadcast %cst_4 : f32 to vector<16x32xf32>
    %11 = arith.mulf %9, %10 : vector<16x32xf32>
    %12 = vector.broadcast %1 : vector<1x32xf32> to vector<16x32xf32>
    %13 = arith.mulf %11, %12 : vector<16x32xf32>
    %c0_5 = arith.constant 0 : index
    %c0_6 = arith.constant 0 : index
    %14 = vector.load %arg3[%c0_5, %c0_6] : memref<32x32xf32, #tpu.memory_space<vmem>>, vector<32x32xf32>
    %cst_7 = arith.constant dense<0.000000e+00> : vector<16x32xf32>
    %15 = tpu.matmul %13, %14, %cst_7 {dimension_numbers = #tpu.dot_dimension_numbers<[1], [0], [0], [1], [0, 0, 1, 1], [], []>} : vector<16x32xf32>, vector<32x32xf32>, vector<16x32xf32> -> vector<16x32xf32>
    %c0_8 = arith.constant 0 : index
    %c0_9 = arith.constant 0 : index
    %16 = vector.load %arg6[%c0_8, %c0_9] : memref<16x32xf32, #tpu.memory_space<vmem>>, vector<16x32xf32>
    tpu.vector_store %arg6[%c0_8, %c0_9], %15 {strides = array<i32>} : memref<16x32xf32, #tpu.memory_space<vmem>>, vector<16x32xf32>,
    %c0_10 = arith.constant 0 : index
    %c0_11 = arith.constant 0 : index
    %17 = vector.load %arg4[%c0_10, %c0_11] : memref<32x32xf32, #tpu.memory_space<vmem>>, vector<32x32xf32>
    %cst_12 = arith.constant dense<0.000000e+00> : vector<16x32xf32>
    %18 = tpu.matmul %13, %17, %cst_12 {dimension_numbers = #tpu.dot_dimension_numbers<[1], [0], [0], [1], [0, 0, 1, 1], [], []>} : vector<16x32xf32>, vector<32x32xf32>, vector<16x32xf32> -> vector<16x32xf32>
    %c0_13 = arith.constant 0 : index
    %c0_14 = arith.constant 0 : index
    %19 = vector.load %arg7[%c0_13, %c0_14] : memref<16x32xf32, #tpu.memory_space<vmem>>, vector<16x32xf32>
    tpu.vector_store %arg7[%c0_13, %c0_14], %18 {strides = array<i32>} : memref<16x32xf32, #tpu.memory_space<vmem>>, vector<16x32xf32>,
    %c0_15 = arith.constant 0 : index
    %c0_16 = arith.constant 0 : index
    %20 = vector.load %arg5[%c0_15, %c0_16] : memref<32x32xf32, #tpu.memory_space<vmem>>, vector<32x32xf32>
    %cst_17 = arith.constant dense<0.000000e+00> : vector<16x32xf32>
    %21 = tpu.matmul %13, %20, %cst_17 {dimension_numbers = #tpu.dot_dimension_numbers<[1], [0], [0], [1], [0, 0, 1, 1], [], []>} : vector<16x32xf32>, vector<32x32xf32>, vector<16x32xf32> -> vector<16x32xf32>
    %c0_18 = arith.constant 0 : index
    %c0_19 = arith.constant 0 : index
    %22 = vector.load %arg8[%c0_18, %c0_19] : memref<16x32xf32, #tpu.memory_space<vmem>>, vector<16x32xf32>
    tpu.vector_store %arg8[%c0_18, %c0_19], %21 {strides = array<i32>} : memref<16x32xf32, #tpu.memory_space<vmem>>, vector<16x32xf32>,
    return
  }
  func.func @transform_0(%arg0: i32) -> (i32, i32) {
    %c0_i32 = arith.constant 0 : i32
    %c0_i32_0 = arith.constant 0 : i32
    return %arg0, %c0_i32 : i32, i32
  }
  func.func @transform_1(%arg0: i32) -> (i32, i32) {
    %c0_i32 = arith.constant 0 : i32
    %c0_i32_0 = arith.constant 0 : i32
    %c0_i32_1 = arith.constant 0 : i32
    return %c0_i32, %c0_i32_0 : i32, i32
  }
  func.func @transform_2(%arg0: i32) -> (i32, i32) {
    %c0_i32 = arith.constant 0 : i32
    %c0_i32_0 = arith.constant 0 : i32
    %c0_i32_1 = arith.constant 0 : i32
    return %c0_i32, %c0_i32_0 : i32, i32
  }
  func.func @transform_3(%arg0: i32) -> (i32, i32) {
    %c0_i32 = arith.constant 0 : i32
    %c0_i32_0 = arith.constant 0 : i32
    %c0_i32_1 = arith.constant 0 : i32
    return %c0_i32, %c0_i32_0 : i32, i32
  }
  func.func @transform_4(%arg0: i32) -> (i32, i32) {
    %c0_i32 = arith.constant 0 : i32
    %c0_i32_0 = arith.constant 0 : i32
    %c0_i32_1 = arith.constant 0 : i32
    return %c0_i32, %c0_i32_0 : i32, i32
  }
  func.func @transform_5(%arg0: i32) -> (i32, i32) {
    %c0_i32 = arith.constant 0 : i32
    %c0_i32_0 = arith.constant 0 : i32
    return %arg0, %c0_i32 : i32, i32
  }
  func.func @transform_6(%arg0: i32) -> (i32, i32) {
    %c0_i32 = arith.constant 0 : i32
    %c0_i32_0 = arith.constant 0 : i32
    return %arg0, %c0_i32 : i32, i32
  }
  func.func @transform_7(%arg0: i32) -> (i32, i32) {
    %c0_i32 = arith.constant 0 : i32
    %c0_i32_0 = arith.constant 0 : i32
    return %arg0, %c0_i32 : i32, i32
  }
}

</mosaic_0001>

<bundles_post_ra>
// kernel: tpu_custom_call.1
= control target key start
LH: loop header
LB: loop body
LE: loop exit
PB: predicated region body
PF: predicated region fallthrough
CT: control target
= control target key end

     0   :  { %13 = vsyncpa [#allocation3], 0  ;;  %s754_s0 = inlined_call_operand.hbm [shape: f32[16,32], index: 0, kind: input, shape index: {}]   ;;  %s755_s1 = inlined_call_operand.vmem [shape: f32[1,32], index: 1, kind: input, shape index: {}]   ;;  %s756_s2 = inlined_call_operand.hbm [shape: f32[32,32], index: 2, kind: input, shape index: {}]   ;;  %s757_s3 = inlined_call_operand.hbm [shape: f32[32,32], index: 3, kind: input, shape index: {}]   ;;  %s758_s4 = inlined_call_operand.hbm [shape: f32[32,32], index: 4, kind: input, shape index: {}]   ;;  %s759_s5 = inlined_call_operand.hbm [shape: f32[16,32], index: 5, kind: output, shape index: {0}]   ;;  %s760_s6 = inlined_call_operand.hbm [shape: f32[16,32], index: 6, kind: output, shape index: {1}]   ;;  %s761_s7 = inlined_call_operand.hbm [shape: f32[16,32], index: 7, kind: output, shape index: {2}]  }
   0x1   :  { %14 = vsyncpa [#allocation6], 0 }
   0x2   :  { %15 = vsyncpa [#allocation9], 0 }
   0x3   :  { %16 = vsyncpa [#allocation4], 0 }
   0x4   :  { %17 = vsyncpa [#allocation12], 0  ;;  %s646_s24 = smov [#allocation5]   ;;  %s647_s26 = smov [#allocation2]  }
   0x5   :  { %s37_s25 = sshll.u32 %s646_s24, 4  ;;  %s23_s27 = sshll.u32 %s647_s26, 4  ;;  %s38_s25 = int_to_ptr.vmem [resolvable:$true] %s37_s25  ;;  %s24_s27 = int_to_ptr.vmem [resolvable:$true] %s23_s27 }
   0x6   :  { %s504_s28 = scalar_lea.vmem %s38_s25, 512  ;;  %p509_p1 = scmp.lt.s32.totalorder %s38_s25, %s38_s25 }
   0x7   :  { %p505_p0 = scmp.ne.s32.totalorder %s38_s25, %s504_s28  ;;  %p510_p2 = scmp.lt.s32.totalorder %s504_s28, %s504_s28 }
   0x9   :  { %p511_p3 = por %p510_p2, %p509_p1 }
   0xb   :  { %p512_p4 = pnand %p511_p3, %p505_p0 }
   0xd   :  { %515 = shalt.err (!%p512_p4)
}
   0xe   :  { %s648_s29 = smov 128   ;;  %s649_s30 = smov 8  }
   0xf   :  { %43 = dma.hbm_to_vmem [thread:$0]  %s756_s2, 512, %s38_s25, [#allocation6], %s648_s29, %s648_s29, %s649_s30  }
  0x10   :  { %s524_s10 = scalar_lea.vmem %s24_s27, 256  ;;  %p529_p6 = scmp.lt.s32.totalorder %s24_s27, %s24_s27 }
  0x11   :  { %p525_p5 = scmp.ne.s32.totalorder %s24_s27, %s524_s10  ;;  %p530_p7 = scmp.lt.s32.totalorder %s524_s10, %s524_s10 }
  0x13   :  { %p531_p8 = por %p530_p7, %p529_p6 }
  0x15   :  { %p532_p9 = pnand %p531_p8, %p525_p5 }
  0x17   :  { %535 = shalt.err (!%p532_p9)
}
  0x18   :  { %29 = dma.hbm_to_vmem [thread:$0]  %s754_s0, 256, %s24_s27, [#allocation3], %s648_s29, %s648_s29, %s649_s30  }
  0x19   :  { %s650_s13 = smov [#allocation7]   ;;  %s651_s15 = smov [#allocation8]  }
  0x1a   :  { %s49_s14 = sshll.u32 %s650_s13, 4  ;;  %s61_s16 = sshll.u32 %s651_s15, 4  ;;  %s50_s14 = int_to_ptr.vmem [resolvable:$true] %s49_s14  ;;  %s62_s16 = int_to_ptr.vmem [resolvable:$true] %s61_s16 }
  0x1b   :  { %s544_s2 = scalar_lea.vmem %s50_s14, 512  ;;  %p549_p11 = scmp.lt.s32.totalorder %s50_s14, %s50_s14 }
  0x1c   :  { %p545_p10 = scmp.ne.s32.totalorder %s50_s14, %s544_s2  ;;  %p550_p12 = scmp.lt.s32.totalorder %s544_s2, %s544_s2 }
  0x1e   :  { %p551_p13 = por %p550_p12, %p549_p11 }
  0x20   :  { %p552_p0 = pnand %p551_p13, %p545_p10 }
  0x22   :  { %555 = shalt.err (!%p552_p0)
}
  0x23   :  { %55 = dma.hbm_to_vmem [thread:$0]  %s757_s3, 512, %s50_s14, [#allocation6], %s648_s29, %s648_s29, %s649_s30  }
  0x24   :  { %s564_s0 = scalar_lea.vmem %s62_s16, 512  ;;  %p569_p2 = scmp.lt.s32.totalorder %s62_s16, %s62_s16 }
  0x25   :  { %p565_p1 = scmp.ne.s32.totalorder %s62_s16, %s564_s0  ;;  %p570_p3 = scmp.lt.s32.totalorder %s564_s0, %s564_s0 }
  0x27   :  { %p571_p4 = por %p570_p3, %p569_p2 }
  0x29   :  { %p572_p5 = pnand %p571_p4, %p565_p1 }
  0x2b   :  { %575 = shalt.err (!%p572_p5)
}
  0x2c   :  { %67 = dma.hbm_to_vmem [thread:$0]  %s758_s4, 512, %s62_s16, [#allocation9], %s648_s29, %s648_s29, %s649_s30  }
  0x2d   :  { %636 = dma.done.wait [#allocation3], 256  }
  0x2e   :  { %637 = vsyncadd [#allocation3], 4294967040 }
  0x2f   :  { %638 = dma.done.wait [#allocation6], 1024  }
  0x30   :  { %639 = vsyncadd [#allocation6], 4294966272 }
  0x31   :  { %640 = dma.done.wait [#allocation9], 512  }
  0x32   :  { %641 = vsyncadd [#allocation9], 4294966784  ;;  %v80_v0 = vld [vmem:[#allocation2] sm:$0xff]  ;;  %vm85_vm0 = vcmask 261120   ;;  %v81_v1 = vld [vmem:[#allocation2 + $0x8] sm:$0xff]  ;;  %s653_s22 = smov [#allocation10]  }
  0x33   :  { %v83_v2 = vmul.f32 %v80_v0, %v80_v0  ;;  %v84_v3 = vmul.f32 %v81_v1, %v81_v1  ;;  %v125_v6 = vld [vmem:[#allocation5 + $0x18] sm:$0xff]  ;;  %v124_v8 = vld [vmem:[#allocation5 + $0x10] sm:$0xff]  ;;  %v123_v10 = vld [vmem:[#allocation5 + $0x8] sm:$0xff]  ;;  %s376_s23 = sshll.u32 %s653_s22, 4  ;;  %s377_s23 = int_to_ptr.vmem [resolvable:$true] %s376_s23 }
  0x34   :  { %v212_v7 = vld [vmem:[#allocation7 + $0x18] sm:$0xff]  ;;  %446 = vmatprep.subr.mxu0 %v125_v6  ;;  %v211_v9 = vld [vmem:[#allocation7 + $0x10] sm:$0xff]  ;;  %v210_v11 = vld [vmem:[#allocation7 + $0x8] sm:$0xff] }
  0x35   :  { %v86_v4 = vsel %vm85_vm0, %v83_v2, 0.0  ;;  %v89_v5 = vsel %vm85_vm0, %v84_v3, 0.0  ;;  %457 = vmatprep.subr.mxu1 %v212_v7  ;;  %447 = vmatpush3.msra.mxu0 %v125_v6  ;;  %v122_v12 = vld [vmem:[#allocation5] sm:$0xff]  ;;  %v293_v14 = vld [vmem:[#allocation8 + $0x18] sm:$0xff]  ;;  %v421_v31 = vld [vmem:[%s755_s1] ss:$0 sm:$0xff] }
  0x36   :  { %87 = vadd.xlane.f32.xlu0 %v86_v4  ;;  %458 = vmatpush3.msra.mxu1 %v212_v7  ;;  %v209_v13 = vld [vmem:[#allocation7] sm:$0xff]  ;;  %v292_v38 = vld [vmem:[#allocation8 + $0x10] sm:$0xff]  ;;  %v291_v39 = vld [vmem:[#allocation8 + $0x8] sm:$0xff]  ;;  %s652_s1 = smov [#allocation11]  }
  0x37   :  { %448 = vmatprep.subr.mxu0 %v124_v8  ;;  %459 = vmatprep.subr.mxu1 %v211_v9  ;;  %v290_v40 = vld [vmem:[#allocation8] sm:$0xff]  ;;  %s388_s21 = sshll.u32 %s652_s1, 4  ;;  %s389_s21 = int_to_ptr.vmem [resolvable:$true] %s388_s21 }
  0x38   :  { %449 = vmatpush3.msra.mxu0 %v124_v8  ;;  %460 = vmatpush3.msra.mxu1 %v211_v9  ;;  %s576_s24 = scalar_lea.vmem %s389_s21, 256  ;;  %p581_p7 = scmp.lt.s32.totalorder %s389_s21, %s389_s21 }
  0x39   :  { %450 = vmatprep.subr.mxu0 %v123_v10  ;;  %461 = vmatprep.subr.mxu1 %v210_v11  ;;  %p577_p6 = scmp.ne.s32.totalorder %s389_s21, %s576_s24  ;;  %p582_p8 = scmp.lt.s32.totalorder %s576_s24, %s576_s24 }
  0x3a   :  { %90 = vadd.xlane.f32.xlu0 %v89_v5  ;;  %451 = vmatpush3.msra.mxu0 %v123_v10 }
  0x3b   :  { %452 = vmatprep.subr.mxu0 %v122_v12  ;;  %462 = vmatpush3.msra.mxu1 %v210_v11  ;;  %p583_p9 = por %p582_p8, %p581_p7 }
  0x3c   :  { %453 = vmatpush3.msra.mxu0 %v122_v12  ;;  %463 = vmatprep.subr.mxu1 %v209_v13 }
  0x3d   :  { %464 = vmatpush3.msra.mxu1 %v209_v13  ;;  %468 = vmatprep.subr.mxu0 %v293_v14  ;;  %p584_p10 = pnand %p583_p9, %p577_p6 }
  0xbf   :  { %v88_v15 = vpop.xlane.xlu0 %87 }
  0xc0   :  { %488 = vrsqrt.f32 %v88_v15  ;;  %vm94_vm1 = vcmp.eq.f32.partialorder %v88_v15, inf  ;;  %v97_v19 = vand.u32 2147483648, %v88_v15  ;;  %vm96_vm2 = vcmp.eq.f32.partialorder %v88_v15, 0.0 }
  0xc3   :  { %v91_v16 = vpop.xlane.xlu0 %90 }
  0xc4   :  { %490 = vrsqrt.f32 %v91_v16  ;;  %vm101_vm3 = vcmp.eq.f32.partialorder %v91_v16, inf  ;;  %v104_v25 = vand.u32 2147483648, %v91_v16  ;;  %vm103_vm4 = vcmp.eq.f32.partialorder %v91_v16, 0.0 }
  0xcd   :  { %v489_v17 = vpop.eup %488 }
  0xce   :  { %v93_v18 = vmul.f32 %v489_v17, %v88_v15 }
  0xd0   :  { %v95_v20 = vsel %vm94_vm1, %v88_v15, %v93_v18 }
  0xd1   :  { %v491_v21 = vpop.eup %490  ;;  %v98_v22 = vsel %vm96_vm2, %v97_v19, %v95_v20 }
  0xd2   :  { %v106_v23 = vmax.f32 %v98_v22, 1e-12  ;;  %v100_v24 = vmul.f32 %v491_v21, %v91_v16 }
  0xd4   :  { %492 = vrcp.f32 %v106_v23  ;;  %v102_v26 = vsel %vm101_vm3, %v91_v16, %v100_v24 }
  0xd5   :  { %v105_v27 = vsel %vm103_vm4, %v104_v25, %v102_v26 }
  0xd6   :  { %v107_v28 = vmax.f32 %v105_v27, 1e-12 }
  0xd8   :  { %494 = vrcp.f32 %v107_v28 }
  0xe1   :  { %v493_v29 = vpop.eup %492 }
  0xe2   :  { %v109_v30 = vmul.f32 %v493_v29, %v80_v0 }
  0xe4   :  { %v112_v32 = vmul.f32 5.656854, %v109_v30 }
  0xe5   :  { %v495_v33 = vpop.eup %494 }
  0xe6   :  { %v111_v34 = vmul.f32 %v495_v33, %v81_v1  ;;  %v120_v35 = vmul.f32 %v421_v31, %v112_v32 }
  0xe8   :  { %v113_v36 = vmul.f32 5.656854, %v111_v34  ;;  %454 = vmatprep.mubr.msk.f32.mxu0 %vm85_vm0, %v120_v35  ;;  %465 = vmatprep.mubr.msk.f32.mxu1 %vm85_vm0, %v120_v35 }
  0xea   :  { %v121_v37 = vmul.f32 %v421_v31, %v113_v36 }
  0xec   :  { %455 = vmatmul.mubr.msk.f32.vlgmr.msra.gmra.mxu0 %vm85_vm0, %v121_v37  ;;  %466 = vmatmul.mubr.msk.f32.vlgmr.msra.gmra.mxu1 %vm85_vm0, %v121_v37 }
  0xed   :  { %469 = vmatpush3.msra.mxu0 %v293_v14  ;;  %476 = vmatprep.mubr.msk.f32.mxu0 %vm85_vm0, %v120_v35 }
  0xee   :  { %470 = vmatprep.subr.mxu0 %v292_v38 }
  0xef   :  { %471 = vmatpush3.msra.mxu0 %v292_v38 }
  0xf0   :  { %472 = vmatprep.subr.mxu0 %v291_v39 }
  0xf1   :  { %473 = vmatpush3.msra.mxu0 %v291_v39 }
  0xf2   :  { %474 = vmatprep.subr.mxu0 %v290_v40 }
  0xf3   :  { %475 = vmatpush3.msra.mxu0 %v290_v40 }
  0xf4   :  { %477 = vmatmul.mubr.msk.f32.vlgmr.msra.gmra.mxu0 %vm85_vm0, %v121_v37 }
 0x1ac   :  { %v456_v41 = vpop.f32.mrf.mxu0  ;;  %v467_v42 = vpop.f32.mrf.mxu1 }
 0x1ad   :  { %208 = vst.msk [vmem:[#allocation10 + $0x8] sm:$0xff] %vm85_vm0, %v456_v41  ;;  %289 = vst.msk [vmem:[#allocation11 + $0x8] sm:$0xff] %vm85_vm0, %v467_v42 }
 0x1ae   :  { %v198_v43 = vpop.f32.mrf.mxu0  ;;  %v279_v44 = vpop.f32.mrf.mxu1 }
 0x1af   :  { %207 = vst.msk [vmem:[#allocation10] sm:$0xff] %vm85_vm0, %v198_v43  ;;  %288 = vst.msk [vmem:[#allocation11] sm:$0xff] %vm85_vm0, %v279_v44 }
 0x1b0   :  { %587 = shalt.err (!%p584_p10)
}
 0x1b1   :  { %394 = dma.vmem_to_hbm [thread:$0]  %s389_s21, 256, %s760_s6, [#allocation12], %s648_s29, %s648_s29, %s649_s30  }
 0x1b2   :  { %s596_s27 = scalar_lea.vmem %s377_s23, 256  ;;  %p601_p12 = scmp.lt.s32.totalorder %s377_s23, %s377_s23 }
 0x1b3   :  { %p597_p11 = scmp.ne.s32.totalorder %s377_s23, %s596_s27  ;;  %p602_p13 = scmp.lt.s32.totalorder %s596_s27, %s596_s27 }
 0x1b5   :  { %p603_p0 = por %p602_p13, %p601_p12 }
 0x1b7   :  { %p604_p1 = pnand %p603_p0, %p597_p11 }
 0x1b9   :  { %607 = shalt.err (!%p604_p1)
}
 0x1ba   :  { %382 = dma.vmem_to_hbm [thread:$0]  %s377_s23, 256, %s759_s5, [#allocation4], %s648_s29, %s648_s29, %s649_s30   ;;  %v478_v45 = vpop.f32.mrf.mxu0 }
 0x1bb   :  { %s654_s9 = smov [#allocation13]   ;;  %370 = vst.msk [vmem:[#allocation13 + $0x8] sm:$0xff] %vm85_vm0, %v478_v45 }
 0x1bc   :  { %s400_s10 = sshll.u32 %s654_s9, 4  ;;  %v360_v46 = vpop.f32.mrf.mxu0  ;;  %s401_s10 = int_to_ptr.vmem [resolvable:$true] %s400_s10 }
 0x1bd   :  { %369 = vst.msk [vmem:[#allocation13] sm:$0xff] %vm85_vm0, %v360_v46  ;;  %s616_s6 = scalar_lea.vmem %s401_s10, 256  ;;  %p621_p3 = scmp.lt.s32.totalorder %s401_s10, %s401_s10 }
 0x1be   :  { %p617_p2 = scmp.ne.s32.totalorder %s401_s10, %s616_s6  ;;  %p622_p4 = scmp.lt.s32.totalorder %s616_s6, %s616_s6 }
 0x1c0   :  { %p623_p5 = por %p622_p4, %p621_p3 }
 0x1c2   :  { %p624_p6 = pnand %p623_p5, %p617_p2 }
 0x1c4   :  { %627 = shalt.err (!%p624_p6)
}
 0x1c5   :  { %406 = dma.vmem_to_hbm [thread:$0]  %s401_s10, 256, %s761_s7, [#allocation12], %s648_s29, %s648_s29, %s649_s30  }
 0x1c6   :  { %642 = dma.done.wait [#allocation4], 256  }
 0x1c7   :  { %643 = vsyncadd [#allocation4], 4294967040 }
 0x1c8   :  { %644 = dma.done.wait [#allocation12], 512  }
 0x1c9   :  { %645 = vsyncadd [#allocation12], 4294966784 }
 0x1ca   :  { %416 = vsyncpa [#allocation3], 1 }
 0x1cb   :  { %417 = vsyncpa [#allocation6], 1 }
 0x1cc   :  { %418 = vsyncpa [#allocation9], 1 }
 0x1cd   :  { %419 = vsyncpa [#allocation4], 1 }
 0x1ce   :  { %420 = vsyncpa [#allocation12], 1 }

</bundles_post_ra>
